<compile_context>
chip_gen: v7x
topology: tpu7x:2x2x1
jax: 0.10.0
libtpu: 0.0.40
codegen_flags: <defaults>
</compile_context>

<pallas_src>
import jax
import jax.numpy as jnp
from jax.experimental import pallas as pl
from jax.experimental.pallas import tpu as pltpu

LANE = 128        # lane width: hidden/output feature dims padded to this
SUBLANE = 8       # sublane granularity for the batch dim
MAX_TILE_B = 1024 # rows per grid step cap (amortizes per-step overhead)

# bf16 activations halve VPU work / vreg bytes on v6e/v7x (bf16 VALU+EUP).
# On v5e (no bf16 VPU/EUP) set this to jnp.float32.
ACT_DTYPE = jnp.bfloat16


def _cdiv(a, b):
    return -(-a // b)


def _round_up(n, m):
    return _cdiv(n, m) * m


def _choose_batch_tiling(batch):
    """Even multiple-of-8 batch split, capped at MAX_TILE_B rows per tile.

    Guarantees >= 2 grid steps whenever batch > 8 so the 'parallel' batch axis
    keeps both v7x TensorCores busy (single-TC v5e/v6e are unaffected), and
    pads at most 7 rows per tile.
    """
    n = _cdiv(batch, MAX_TILE_B)
    if n == 1 and batch > SUBLANE:
        n = 2
    tile_b = _round_up(_cdiv(batch, n), SUBLANE)
    grid_b = _cdiv(batch, tile_b)
    return tile_b, grid_b


def mlp_kernel(x_ref,
               w1_ref, b1_ref,
               w2_ref, b2_ref,
               w3_ref, b3_ref,
               w4_ref, b4_ref,
               w5_ref, b5_ref,
               o_ref):
    # MXU operands in bf16, accumulation + bias add in f32, inter-layer
    # activations in ACT_DTYPE.
    def dense(h, w_ref, b_ref):
        return jnp.dot(h.astype(jnp.bfloat16), w_ref[...],
                       preferred_element_type=jnp.float32) + b_ref[...]

    h = jnp.maximum(dense(x_ref[...], w1_ref, b1_ref).astype(ACT_DTYPE), 0.0)
    h = jnp.maximum(dense(h, w2_ref, b2_ref).astype(ACT_DTYPE), 0.0)
    h = jnp.maximum(dense(h, w3_ref, b3_ref).astype(ACT_DTYPE), 0.0)

    # Swish in f32: exp and the approximate reciprocal both execute on the EUP
    # slot, keeping the divide off the VALU.
    z = dense(h, w4_ref, b4_ref)
    sig = pl.reciprocal(1.0 + jnp.exp(-z), approx=True)
    h = (z * sig).astype(ACT_DTYPE)

    y = dense(h, w5_ref, b5_ref)
    o_ref[...] = y.astype(o_ref.dtype)


def networkc_forward(x, params, output_size):
    """x: (B, input_size) float32. Returns (B, output_size) float32."""
    B, in_features = x.shape
    assert params["w1"].shape[0] == in_features
    h_pad = params["w2"].shape[0]
    o_pad = params["w5"].shape[1]

    tile_b, grid_b = _choose_batch_tiling(B)
    b_pad = tile_b * grid_b  # output is exactly tiled; only x's last block is partial

    weight_args = (params["w1"], params["b1"],
                   params["w2"], params["b2"],
                   params["w3"], params["b3"],
                   params["w4"], params["b4"],
                   params["w5"], params["b5"])

    # x streamed at true width; last batch tile may read past B -- those rows
    # are row-independent garbage and are never written back / are sliced off.
    in_specs = [pl.BlockSpec((tile_b, in_features), lambda i: (i, 0))]
    for w in weight_args:
        # Constant index_map -> weights/biases stay resident in VMEM across
        # grid steps (no re-DMA).  (pipeline_mode=pl.Buffered(1) would also
        # drop their double-buffer; irrelevant at hidden=32.)
        in_specs.append(pl.BlockSpec(w.shape, lambda i: (0, 0)))
    out_specs = pl.BlockSpec((tile_b, o_pad), lambda i: (i, 0))

    flops = 2 * b_pad * (in_features * h_pad + 3 * h_pad * h_pad + h_pad * o_pad)
    bytes_accessed = (x.size * x.dtype.itemsize
                      + sum(int(w.size) * w.dtype.itemsize for w in weight_args)
                      + b_pad * o_pad * 4)
    cost = pl.CostEstimate(flops=flops,
                           transcendentals=2 * b_pad * h_pad,  # swish exp + rcp
                           bytes_accessed=bytes_accessed)

    out = pl.pallas_call(
        mlp_kernel,
        out_shape=jax.ShapeDtypeStruct((b_pad, o_pad), jnp.float32),
        grid=(grid_b,),
        in_specs=in_specs,
        out_specs=out_specs,
        compiler_params=pltpu.CompilerParams(
            dimension_semantics=("parallel",)),   # batch axis shards across TCs
        cost_estimate=cost,
    )(x, *weight_args)

    # Slice back to the public contract.
    return out[:B, :output_size]


def init_params(key, input_size, hidden_size, output_size):
    """nn.Linear-style uniform(-1/sqrt(fan_in), 1/sqrt(fan_in)) init.
    Weights stored (in, out), bf16; layer-1 K is un-padded (matches streamed x),
    deeper K dims and all out dims are zero-padded to 128 lanes; biases f32."""
    dims = [(input_size, hidden_size),
            (hidden_size, hidden_size),
            (hidden_size, hidden_size),
            (hidden_size, hidden_size),
            (hidden_size, output_size)]
    params = {}
    for i, (fan_in, fan_out) in enumerate(dims, start=1):
        key, kw, kb = jax.random.split(key, 3)
        bound = 1.0 / (fan_in ** 0.5)
        w = jax.random.uniform(kw, (fan_in, fan_out), jnp.float32, -bound, bound)
        b = jax.random.uniform(kb, (fan_out,), jnp.float32, -bound, bound)
        in_pad = fan_in if i == 1 else _round_up(fan_in, LANE)
        out_pad = _round_up(fan_out, LANE)
        w_p = jnp.zeros((in_pad, out_pad), jnp.float32).at[:fan_in, :fan_out].set(w)
        b_p = jnp.zeros((1, out_pad), jnp.float32).at[0, :fan_out].set(b)
        params[f"w{i}"] = w_p.astype(jnp.bfloat16)
        params[f"b{i}"] = b_p
    return params


def reference_forward(x, params, output_size):
    """Pure-JAX reference replicating the kernel's dtype flow (bf16 MXU operands
    + bf16 activations, f32 accumulation) on the padded weights, then sliced."""
    h = x
    for i in range(1, 6):
        z = jnp.dot(h.astype(jnp.bfloat16), params[f"w{i}"],
                    preferred_element_type=jnp.float32) + params[f"b{i}"]
        if i <= 3:
            h = jnp.maximum(z.astype(ACT_DTYPE), 0.0)
        elif i == 4:
            sig = 1.0 / (1.0 + jnp.exp(-z))
            h = (z * sig).astype(ACT_DTYPE)
        else:
            h = z
    return h[:, :output_size]


if __name__ == "__main__":
    B, input_size, hidden_size, output_size = 8, 16, 32, 8

    key = jax.random.PRNGKey(0)
    key, kx = jax.random.split(key)
    x = jax.random.normal(kx, (B, input_size), jnp.float32)
    params = init_params(key, input_size, hidden_size, output_size)

    out = networkc_forward(x, params, output_size)
    out = jax.block_until_ready(out)

    ref = reference_forward(x, params, output_size)
    assert out.shape == (B, output_size)
    # Tolerance covers the approximate EUP reciprocal in the kernel's swish.
    assert jnp.allclose(out, ref, atol=2e-2, rtol=2e-2), "mismatch vs reference"

    print("KERNEL_OK")
</pallas_src>

<mosaic_0001>
module attributes {stable_mosaic.version = 11 : i64} {
  func.func @mlp_kernel(%arg0: i32, %arg1: memref<8x16xf32, #tpu.memory_space<vmem>>, %arg2: memref<16x128xbf16, #tpu.memory_space<vmem>>, %arg3: memref<1x128xf32, #tpu.memory_space<vmem>>, %arg4: memref<128x128xbf16, #tpu.memory_space<vmem>>, %arg5: memref<1x128xf32, #tpu.memory_space<vmem>>, %arg6: memref<128x128xbf16, #tpu.memory_space<vmem>>, %arg7: memref<1x128xf32, #tpu.memory_space<vmem>>, %arg8: memref<128x128xbf16, #tpu.memory_space<vmem>>, %arg9: memref<1x128xf32, #tpu.memory_space<vmem>>, %arg10: memref<128x128xbf16, #tpu.memory_space<vmem>>, %arg11: memref<1x128xf32, #tpu.memory_space<vmem>>, %arg12: memref<8x128xf32, #tpu.memory_space<vmem>>) attributes {dimension_semantics = [#tpu.dimension_semantics<parallel>], iteration_bounds = array<i64: 1>, scalar_prefetch = 0 : i64, scratch_operands = 0 : i64, tpu.core_type = #tpu.core_type<tc>, window_params = [{transform_indices = @transform_0, window_bounds = array<i64: 8, 16>}, {pipeline_mode = #tpu.pipeline_mode<synchronous>, transform_indices = @transform_1, window_bounds = array<i64: 16, 128>}, {pipeline_mode = #tpu.pipeline_mode<synchronous>, transform_indices = @transform_2, window_bounds = array<i64: 1, 128>}, {pipeline_mode = #tpu.pipeline_mode<synchronous>, transform_indices = @transform_3, window_bounds = array<i64: 128, 128>}, {pipeline_mode = #tpu.pipeline_mode<synchronous>, transform_indices = @transform_4, window_bounds = array<i64: 1, 128>}, {pipeline_mode = #tpu.pipeline_mode<synchronous>, transform_indices = @transform_5, window_bounds = array<i64: 128, 128>}, {pipeline_mode = #tpu.pipeline_mode<synchronous>, transform_indices = @transform_6, window_bounds = array<i64: 1, 128>}, {pipeline_mode = #tpu.pipeline_mode<synchronous>, transform_indices = @transform_7, window_bounds = array<i64: 128, 128>}, {pipeline_mode = #tpu.pipeline_mode<synchronous>, transform_indices = @transform_8, window_bounds = array<i64: 1, 128>}, {pipeline_mode = #tpu.pipeline_mode<synchronous>, transform_indices = @transform_9, window_bounds = array<i64: 128, 128>}, {pipeline_mode = #tpu.pipeline_mode<synchronous>, transform_indices = @transform_10, window_bounds = array<i64: 1, 128>}, {transform_indices = @transform_11, window_bounds = array<i64: 8, 128>}]} {
    %c0 = arith.constant 0 : index
    %c0_0 = arith.constant 0 : index
    %0 = vector.load %arg1[%c0, %c0_0] : memref<8x16xf32, #tpu.memory_space<vmem>>, vector<8x16xf32>
    %1 = arith.truncf %0 : vector<8x16xf32> to vector<8x16xbf16>
    %c0_1 = arith.constant 0 : index
    %c0_2 = arith.constant 0 : index
    %2 = vector.load %arg2[%c0_1, %c0_2] : memref<16x128xbf16, #tpu.memory_space<vmem>>, vector<16x128xbf16>
    %cst = arith.constant dense<0.000000e+00> : vector<8x128xf32>
    %3 = tpu.matmul %1, %2, %cst {dimension_numbers = #tpu.dot_dimension_numbers<[1], [0], [0], [1], [0, 0, 1, 1], [], []>} : vector<8x16xbf16>, vector<16x128xbf16>, vector<8x128xf32> -> vector<8x128xf32>
    %c0_3 = arith.constant 0 : index
    %c0_4 = arith.constant 0 : index
    %4 = vector.load %arg3[%c0_3, %c0_4] : memref<1x128xf32, #tpu.memory_space<vmem>>, vector<1x128xf32>
    %5 = vector.broadcast %4 : vector<1x128xf32> to vector<8x128xf32>
    %6 = arith.addf %3, %5 : vector<8x128xf32>
    %7 = arith.truncf %6 : vector<8x128xf32> to vector<8x128xbf16>
    %cst_5 = arith.constant 0.000000e+00 : bf16
    %8 = vector.broadcast %cst_5 : bf16 to vector<8x128xbf16>
    %9 = arith.maximumf %7, %8 : vector<8x128xbf16>
    %c0_6 = arith.constant 0 : index
    %c0_7 = arith.constant 0 : index
    %10 = vector.load %arg4[%c0_6, %c0_7] : memref<128x128xbf16, #tpu.memory_space<vmem>>, vector<128x128xbf16>
    %cst_8 = arith.constant dense<0.000000e+00> : vector<8x128xf32>
    %11 = tpu.matmul %9, %10, %cst_8 {dimension_numbers = #tpu.dot_dimension_numbers<[1], [0], [0], [1], [0, 0, 1, 1], [], []>} : vector<8x128xbf16>, vector<128x128xbf16>, vector<8x128xf32> -> vector<8x128xf32>
    %c0_9 = arith.constant 0 : index
    %c0_10 = arith.constant 0 : index
    %12 = vector.load %arg5[%c0_9, %c0_10] : memref<1x128xf32, #tpu.memory_space<vmem>>, vector<1x128xf32>
    %13 = vector.broadcast %12 : vector<1x128xf32> to vector<8x128xf32>
    %14 = arith.addf %11, %13 : vector<8x128xf32>
    %15 = arith.truncf %14 : vector<8x128xf32> to vector<8x128xbf16>
    %cst_11 = arith.constant 0.000000e+00 : bf16
    %16 = vector.broadcast %cst_11 : bf16 to vector<8x128xbf16>
    %17 = arith.maximumf %15, %16 : vector<8x128xbf16>
    %c0_12 = arith.constant 0 : index
    %c0_13 = arith.constant 0 : index
    %18 = vector.load %arg6[%c0_12, %c0_13] : memref<128x128xbf16, #tpu.memory_space<vmem>>, vector<128x128xbf16>
    %cst_14 = arith.constant dense<0.000000e+00> : vector<8x128xf32>
    %19 = tpu.matmul %17, %18, %cst_14 {dimension_numbers = #tpu.dot_dimension_numbers<[1], [0], [0], [1], [0, 0, 1, 1], [], []>} : vector<8x128xbf16>, vector<128x128xbf16>, vector<8x128xf32> -> vector<8x128xf32>
    %c0_15 = arith.constant 0 : index
    %c0_16 = arith.constant 0 : index
    %20 = vector.load %arg7[%c0_15, %c0_16] : memref<1x128xf32, #tpu.memory_space<vmem>>, vector<1x128xf32>
    %21 = vector.broadcast %20 : vector<1x128xf32> to vector<8x128xf32>
    %22 = arith.addf %19, %21 : vector<8x128xf32>
    %23 = arith.truncf %22 : vector<8x128xf32> to vector<8x128xbf16>
    %cst_17 = arith.constant 0.000000e+00 : bf16
    %24 = vector.broadcast %cst_17 : bf16 to vector<8x128xbf16>
    %25 = arith.maximumf %23, %24 : vector<8x128xbf16>
    %c0_18 = arith.constant 0 : index
    %c0_19 = arith.constant 0 : index
    %26 = vector.load %arg8[%c0_18, %c0_19] : memref<128x128xbf16, #tpu.memory_space<vmem>>, vector<128x128xbf16>
    %cst_20 = arith.constant dense<0.000000e+00> : vector<8x128xf32>
    %27 = tpu.matmul %25, %26, %cst_20 {dimension_numbers = #tpu.dot_dimension_numbers<[1], [0], [0], [1], [0, 0, 1, 1], [], []>} : vector<8x128xbf16>, vector<128x128xbf16>, vector<8x128xf32> -> vector<8x128xf32>
    %c0_21 = arith.constant 0 : index
    %c0_22 = arith.constant 0 : index
    %28 = vector.load %arg9[%c0_21, %c0_22] : memref<1x128xf32, #tpu.memory_space<vmem>>, vector<1x128xf32>
    %29 = vector.broadcast %28 : vector<1x128xf32> to vector<8x128xf32>
    %30 = arith.addf %27, %29 : vector<8x128xf32>
    %cst_23 = arith.constant 0.000000e+00 : f32
    %31 = vector.broadcast %cst_23 : f32 to vector<8x128xf32>
    %32 = arith.subf %31, %30 : vector<8x128xf32>
    %33 = math.exp %32 : vector<8x128xf32>
    %cst_24 = arith.constant 1.000000e+00 : f32
    %34 = vector.broadcast %cst_24 : f32 to vector<8x128xf32>
    %35 = arith.addf %34, %33 : vector<8x128xf32>
    %36 = tpu.reciprocal %35 {approx = true} : vector<8x128xf32> -> vector<8x128xf32>
    %37 = arith.mulf %30, %36 : vector<8x128xf32>
    %38 = arith.truncf %37 : vector<8x128xf32> to vector<8x128xbf16>
    %c0_25 = arith.constant 0 : index
    %c0_26 = arith.constant 0 : index
    %39 = vector.load %arg10[%c0_25, %c0_26] : memref<128x128xbf16, #tpu.memory_space<vmem>>, vector<128x128xbf16>
    %cst_27 = arith.constant dense<0.000000e+00> : vector<8x128xf32>
    %40 = tpu.matmul %38, %39, %cst_27 {dimension_numbers = #tpu.dot_dimension_numbers<[1], [0], [0], [1], [0, 0, 1, 1], [], []>} : vector<8x128xbf16>, vector<128x128xbf16>, vector<8x128xf32> -> vector<8x128xf32>
    %c0_28 = arith.constant 0 : index
    %c0_29 = arith.constant 0 : index
    %41 = vector.load %arg11[%c0_28, %c0_29] : memref<1x128xf32, #tpu.memory_space<vmem>>, vector<1x128xf32>
    %42 = vector.broadcast %41 : vector<1x128xf32> to vector<8x128xf32>
    %43 = arith.addf %40, %42 : vector<8x128xf32>
    %c0_30 = arith.constant 0 : index
    %c0_31 = arith.constant 0 : index
    %44 = vector.load %arg12[%c0_30, %c0_31] : memref<8x128xf32, #tpu.memory_space<vmem>>, vector<8x128xf32>
    tpu.vector_store %arg12[%c0_30, %c0_31], %43 {strides = array<i32>} : memref<8x128xf32, #tpu.memory_space<vmem>>, vector<8x128xf32>,
    return
  }
  func.func @transform_0(%arg0: i32) -> (i32, i32) {
    %c0_i32 = arith.constant 0 : i32
    %c0_i32_0 = arith.constant 0 : i32
    return %arg0, %c0_i32 : i32, i32
  }
  func.func @transform_1(%arg0: i32) -> (i32, i32) {
    %c0_i32 = arith.constant 0 : i32
    %c0_i32_0 = arith.constant 0 : i32
    %c0_i32_1 = arith.constant 0 : i32
    return %c0_i32, %c0_i32_0 : i32, i32
  }
  func.func @transform_2(%arg0: i32) -> (i32, i32) {
    %c0_i32 = arith.constant 0 : i32
    %c0_i32_0 = arith.constant 0 : i32
    %c0_i32_1 = arith.constant 0 : i32
    return %c0_i32, %c0_i32_0 : i32, i32
  }
  func.func @transform_3(%arg0: i32) -> (i32, i32) {
    %c0_i32 = arith.constant 0 : i32
    %c0_i32_0 = arith.constant 0 : i32
    %c0_i32_1 = arith.constant 0 : i32
    return %c0_i32, %c0_i32_0 : i32, i32
  }
  func.func @transform_4(%arg0: i32) -> (i32, i32) {
    %c0_i32 = arith.constant 0 : i32
    %c0_i32_0 = arith.constant 0 : i32
    %c0_i32_1 = arith.constant 0 : i32
    return %c0_i32, %c0_i32_0 : i32, i32
  }
  func.func @transform_5(%arg0: i32) -> (i32, i32) {
    %c0_i32 = arith.constant 0 : i32
    %c0_i32_0 = arith.constant 0 : i32
    %c0_i32_1 = arith.constant 0 : i32
    return %c0_i32, %c0_i32_0 : i32, i32
  }
  func.func @transform_6(%arg0: i32) -> (i32, i32) {
    %c0_i32 = arith.constant 0 : i32
    %c0_i32_0 = arith.constant 0 : i32
    %c0_i32_1 = arith.constant 0 : i32
    return %c0_i32, %c0_i32_0 : i32, i32
  }
  func.func @transform_7(%arg0: i32) -> (i32, i32) {
    %c0_i32 = arith.constant 0 : i32
    %c0_i32_0 = arith.constant 0 : i32
    %c0_i32_1 = arith.constant 0 : i32
    return %c0_i32, %c0_i32_0 : i32, i32
  }
  func.func @transform_8(%arg0: i32) -> (i32, i32) {
    %c0_i32 = arith.constant 0 : i32
    %c0_i32_0 = arith.constant 0 : i32
    %c0_i32_1 = arith.constant 0 : i32
    return %c0_i32, %c0_i32_0 : i32, i32
  }
  func.func @transform_9(%arg0: i32) -> (i32, i32) {
    %c0_i32 = arith.constant 0 : i32
    %c0_i32_0 = arith.constant 0 : i32
    %c0_i32_1 = arith.constant 0 : i32
    return %c0_i32, %c0_i32_0 : i32, i32
  }
  func.func @transform_10(%arg0: i32) -> (i32, i32) {
    %c0_i32 = arith.constant 0 : i32
    %c0_i32_0 = arith.constant 0 : i32
    %c0_i32_1 = arith.constant 0 : i32
    return %c0_i32, %c0_i32_0 : i32, i32
  }
  func.func @transform_11(%arg0: i32) -> (i32, i32) {
    %c0_i32 = arith.constant 0 : i32
    %c0_i32_0 = arith.constant 0 : i32
    return %arg0, %c0_i32 : i32, i32
  }
}

</mosaic_0001>

<bundles_post_ra>
// kernel: tpu_custom_call.1
= control target key start
LH: loop header
LB: loop body
LE: loop exit
PB: predicated region body
PF: predicated region fallthrough
CT: control target
= control target key end

     0   :  { %16 = vsyncpa [#allocation3], 0  ;;  %s1262_s0 = inlined_call_operand.hbm [shape: f32[8,16], index: 0, kind: input, shape index: {}]   ;;  %s1263_s1 = inlined_call_operand.hbm [shape: bf16[16,128], index: 1, kind: input, shape index: {}]   ;;  %s1264_s2 = inlined_call_operand.vmem [shape: f32[1,128], index: 2, kind: input, shape index: {}]   ;;  %s1265_s3 = inlined_call_operand.hbm [shape: bf16[128,128], index: 3, kind: input, shape index: {}]   ;;  %s1266_s4 = inlined_call_operand.vmem [shape: f32[1,128], index: 4, kind: input, shape index: {}]   ;;  %s1267_s5 = inlined_call_operand.hbm [shape: bf16[128,128], index: 5, kind: input, shape index: {}]   ;;  %s1268_s6 = inlined_call_operand.vmem [shape: f32[1,128], index: 6, kind: input, shape index: {}]   ;;  %s1269_s7 = inlined_call_operand.hbm [shape: bf16[128,128], index: 7, kind: input, shape index: {}]   ;;  %s1270_s8 = inlined_call_operand.vmem [shape: f32[1,128], index: 8, kind: input, shape index: {}]   ;;  %s1271_s9 = inlined_call_operand.hbm [shape: bf16[128,128], index: 9, kind: input, shape index: {}]   ;;  %s1272_s10 = inlined_call_operand.vmem [shape: f32[1,128], index: 10, kind: input, shape index: {}]   ;;  %s1273_s11 = inlined_call_operand.hbm [shape: f32[8,128], index: 11, kind: output, shape index: {}]  }
   0x1   :  { %17 = vsyncpa [#allocation6], 0 }
   0x2   :  { %18 = vsyncpa [#allocation9], 0 }
   0x3   :  { %19 = vsyncpa [#allocation12], 0 }
   0x4   :  { %20 = vsyncpa [#allocation4], 0  ;;  %s1033_s17 = smov [#allocation5]   ;;  %s869_s21 = scalar_lea.hbm %s1263_s1, 128 }
   0x5   :  { %s36_s18 = sshll.u32 %s1033_s17, 4  ;;  %p870_p0 = scmp.ne.s32.totalorder %s1263_s1, %s869_s21  ;;  %s37_s18 = int_to_ptr.vmem [resolvable:$true] %s36_s18 }
   0x6   :  { %p873_p1 = scmp.lt.u32.totalorder %s869_s21, %s1263_s1 }
   0x8   :  { %p875_p2 = pnand %p873_p1, %p870_p0 }
   0xa   :  { %878 = shalt.err (!%p875_p2)
}
   0xb   :  { %s879_s26 = scalar_lea.vmem %s37_s18, 128  ;;  %p884_p4 = scmp.lt.s32.totalorder %s37_s18, %s37_s18 }
   0xc   :  { %p880_p3 = scmp.ne.s32.totalorder %s37_s18, %s879_s26  ;;  %p885_p5 = scmp.lt.s32.totalorder %s879_s26, %s879_s26 }
   0xe   :  { %p886_p6 = por %p885_p5, %p884_p4 }
  0x10   :  { %p887_p7 = pnand %p886_p6, %p880_p3 }
  0x12   :  { %890 = shalt.err (!%p887_p7)
}
  0x13   :  { %s1034_s27 = smov 64   ;;  %s1035_s28 = smov 4  }
  0x14   :  { %42 = dma.hbm_to_vmem [thread:$0]  %s1263_s1, 128, %s37_s18, [#allocation6], %s1034_s27, %s1034_s27, %s1035_s28  }
  0x15   :  { %s1036_s12 = smov [#allocation8]   ;;  %s1037_s14 = smov [#allocation2]  }
  0x16   :  { %s64_s13 = sshll.u32 %s1036_s12, 4  ;;  %s27_s15 = sshll.u32 %s1037_s14, 4  ;;  %s65_s13 = int_to_ptr.vmem [resolvable:$true] %s64_s13  ;;  %s28_s15 = int_to_ptr.vmem [resolvable:$true] %s27_s15 }
  0x17   :  { %s891_s19 = scalar_lea.hbm %s1267_s5, 1024 }
  0x18   :  { %p892_p8 = scmp.ne.s32.totalorder %s1267_s5, %s891_s19  ;;  %p895_p9 = scmp.lt.u32.totalorder %s891_s19, %s1267_s5 }
  0x1a   :  { %p897_p10 = pnand %p895_p9, %p892_p8 }
  0x1c   :  { %900 = shalt.err (!%p897_p10)
}
  0x1d   :  { %s901_s1 = scalar_lea.vmem %s65_s13, 1024  ;;  %p906_p12 = scmp.lt.s32.totalorder %s65_s13, %s65_s13 }
  0x1e   :  { %p902_p11 = scmp.ne.s32.totalorder %s65_s13, %s901_s1  ;;  %p907_p13 = scmp.lt.s32.totalorder %s901_s1, %s901_s1 }
  0x20   :  { %p908_p0 = por %p907_p13, %p906_p12 }
  0x22   :  { %p909_p1 = pnand %p908_p0, %p902_p11 }
  0x24   :  { %912 = shalt.err (!%p909_p1)
}
  0x25   :  { %70 = dma.hbm_to_vmem [thread:$0]  %s1267_s5, 1024, %s65_s13, [#allocation9], %s1034_s27, %s1034_s27, %s1035_s28  }
  0x26   :  { %s913_s29 = scalar_lea.hbm %s1262_s0, 128 }
  0x27   :  { %p914_p2 = scmp.ne.s32.totalorder %s1262_s0, %s913_s29  ;;  %p917_p3 = scmp.lt.u32.totalorder %s913_s29, %s1262_s0 }
  0x29   :  { %p919_p4 = pnand %p917_p3, %p914_p2 }
  0x2b   :  { %922 = shalt.err (!%p919_p4)
}
  0x2c   :  { %s923_s17 = scalar_lea.vmem %s28_s15, 128  ;;  %p928_p6 = scmp.lt.s32.totalorder %s28_s15, %s28_s15 }
  0x2d   :  { %p924_p5 = scmp.ne.s32.totalorder %s28_s15, %s923_s17  ;;  %p929_p7 = scmp.lt.s32.totalorder %s923_s17, %s923_s17 }
  0x2f   :  { %p930_p8 = por %p929_p7, %p928_p6 }
  0x31   :  { %p931_p9 = pnand %p930_p8, %p924_p5 }
  0x33   :  { %934 = shalt.err (!%p931_p9)
}
  0x34   :  { %30 = dma.hbm_to_vmem [thread:$0]  %s1262_s0, 128, %s28_s15, [#allocation3]  }
  0x35   :  { %s1038_s19 = smov [#allocation7]   ;;  %s1039_s21 = smov [#allocation10]  }
  0x36   :  { %s50_s20 = sshll.u32 %s1038_s19, 4  ;;  %s78_s22 = sshll.u32 %s1039_s21, 4  ;;  %s51_s20 = int_to_ptr.vmem [resolvable:$true] %s50_s20  ;;  %s79_s22 = int_to_ptr.vmem [resolvable:$true] %s78_s22 }
  0x37   :  { %s935_s18 = scalar_lea.hbm %s1265_s3, 1024 }
  0x38   :  { %p936_p10 = scmp.ne.s32.totalorder %s1265_s3, %s935_s18  ;;  %p939_p11 = scmp.lt.u32.totalorder %s935_s18, %s1265_s3 }
  0x3a   :  { %p941_p12 = pnand %p939_p11, %p936_p10 }
  0x3c   :  { %944 = shalt.err (!%p941_p12)
}
  0x3d   :  { %s945_s0 = scalar_lea.vmem %s51_s20, 1024  ;;  %p950_p0 = scmp.lt.s32.totalorder %s51_s20, %s51_s20 }
  0x3e   :  { %p946_p13 = scmp.ne.s32.totalorder %s51_s20, %s945_s0  ;;  %p951_p1 = scmp.lt.s32.totalorder %s945_s0, %s945_s0 }
  0x40   :  { %p952_p2 = por %p951_p1, %p950_p0 }
  0x42   :  { %p953_p3 = pnand %p952_p2, %p946_p13 }
  0x44   :  { %956 = shalt.err (!%p953_p3)
}
  0x45   :  { %56 = dma.hbm_to_vmem [thread:$0]  %s1265_s3, 1024, %s51_s20, [#allocation6], %s1034_s27, %s1034_s27, %s1035_s28  }
  0x46   :  { %s957_s16 = scalar_lea.hbm %s1269_s7, 1024 }
  0x47   :  { %p958_p4 = scmp.ne.s32.totalorder %s1269_s7, %s957_s16  ;;  %p961_p5 = scmp.lt.u32.totalorder %s957_s16, %s1269_s7 }
  0x49   :  { %p963_p6 = pnand %p961_p5, %p958_p4 }
  0x4b   :  { %966 = shalt.err (!%p963_p6)
}
  0x4c   :  { %s967_s21 = scalar_lea.vmem %s79_s22, 1024  ;;  %p972_p8 = scmp.lt.s32.totalorder %s79_s22, %s79_s22 }
  0x4d   :  { %p968_p7 = scmp.ne.s32.totalorder %s79_s22, %s967_s21  ;;  %p973_p9 = scmp.lt.s32.totalorder %s967_s21, %s967_s21 }
  0x4f   :  { %p974_p10 = por %p973_p9, %p972_p8 }
  0x51   :  { %p975_p11 = pnand %p974_p10, %p968_p7 }
  0x53   :  { %978 = shalt.err (!%p975_p11)
}
  0x54   :  { %84 = dma.hbm_to_vmem [thread:$0]  %s1269_s7, 1024, %s79_s22, [#allocation9], %s1034_s27, %s1034_s27, %s1035_s28  }
  0x55   :  { %s1040_s23 = smov [#allocation11]   ;;  %s979_s25 = scalar_lea.hbm %s1271_s9, 1024 }
  0x56   :  { %s92_s1 = sshll.u32 %s1040_s23, 4  ;;  %p980_p12 = scmp.ne.s32.totalorder %s1271_s9, %s979_s25  ;;  %s93_s1 = int_to_ptr.vmem [resolvable:$true] %s92_s1 }
  0x57   :  { %p983_p13 = scmp.lt.u32.totalorder %s979_s25, %s1271_s9 }
  0x59   :  { %p985_p0 = pnand %p983_p13, %p980_p12 }
  0x5b   :  { %988 = shalt.err (!%p985_p0)
}
  0x5c   :  { %s989_s30 = scalar_lea.vmem %s93_s1, 1024  ;;  %p994_p2 = scmp.lt.s32.totalorder %s93_s1, %s93_s1 }
  0x5d   :  { %p990_p1 = scmp.ne.s32.totalorder %s93_s1, %s989_s30  ;;  %p995_p3 = scmp.lt.s32.totalorder %s989_s30, %s989_s30 }
  0x5f   :  { %p996_p4 = por %p995_p3, %p994_p2 }
  0x61   :  { %p997_p5 = pnand %p996_p4, %p990_p1 }
  0x63   :  { %1000 = shalt.err (!%p997_p5)
}
  0x64   :  { %98 = dma.hbm_to_vmem [thread:$0]  %s1271_s9, 1024, %s93_s1, [#allocation12], %s1034_s27, %s1034_s27, %s1035_s28  }
  0x65   :  { %1023 = dma.done.wait [#allocation3], 128  }
  0x66   :  { %1024 = vsyncadd [#allocation3], 4294967168 }
  0x67   :  { %1025 = dma.done.wait [#allocation6], 1152  }
  0x68   :  { %1026 = vsyncadd [#allocation6], 4294966144 }
  0x69   :  { %1027 = dma.done.wait [#allocation9], 2048  }
  0x6a   :  { %1028 = vsyncadd [#allocation9], 4294965248 }
  0x6b   :  { %1029 = dma.done.wait [#allocation12], 1024  }
  0x6c   :  { %1030 = vsyncadd [#allocation12], 4294966272  ;;  %v1041_v0 = vmov 0.0   ;;  %vm1042_vm0 = vmmov 0   ;;  %v832_v1 = vld [vmem:[#allocation5] sm:$0xff]   ;;  %v120_v2 = vld [vmem:[#allocation2] sm:$0xff] }
  0x6d   :  { %734 = vmatprep.subr.bf16.mxu0 %v1041_v0  ;;  %736 = vmatprep.mubr.msk.bf16.mxu0 %vm1042_vm0, %v1041_v0  ;;  %v121_v3 = vpack.c.bf16 %v120_v2, %v120_v2  ;;  %vm137_vm1 = vcmask 130048   ;;  %v833_v4 = vld [vmem:[#allocation7] sm:$0xff]   ;;  %v834_v5 = vld [vmem:[#allocation7 + $0x8] sm:$0xff]   ;;  %v835_v6 = vld [vmem:[#allocation7 + $0x10] sm:$0xff]   ;;  %v1043_v25 = vmov 0  }
  0x6e   :  { %740 = vmatprep.subr.bf16.mxu1 %v1041_v0  ;;  %756 = vmatprep.mubr.msk.bf16.mxu1 %vm1042_vm0, %v1041_v0  ;;  %v836_v7 = vld [vmem:[#allocation7 + $0x18] sm:$0xff]   ;;  %v837_v8 = vld [vmem:[#allocation7 + $0x20] sm:$0xff]   ;;  %v838_v9 = vld [vmem:[#allocation7 + $0x28] sm:$0xff]  }
  0x6f   :  { %735 = vmatpush3.bf16.msra.mxu0 %v832_v1  ;;  %741 = vmatpush3.bf16.msra.mxu1 %v833_v4  ;;  %v839_v10 = vld [vmem:[#allocation7 + $0x30] sm:$0xff]   ;;  %v840_v11 = vld [vmem:[#allocation7 + $0x38] sm:$0xff]   ;;  %v841_v12 = vld [vmem:[#allocation8] sm:$0xff]  }
  0x70   :  { %760 = vmatprep.subr.bf16.mxu0 %v1041_v0  ;;  %742 = vmatprep.subr.bf16.mxu1 %v1041_v0  ;;  %v842_v13 = vld [vmem:[#allocation8 + $0x8] sm:$0xff]   ;;  %v843_v14 = vld [vmem:[#allocation8 + $0x10] sm:$0xff]   ;;  %v844_v15 = vld [vmem:[#allocation8 + $0x18] sm:$0xff]  }
  0x71   :  { %v845_v16 = vld [vmem:[#allocation8 + $0x20] sm:$0xff]   ;;  %v846_v17 = vld [vmem:[#allocation8 + $0x28] sm:$0xff]   ;;  %v657_v18 = vld [vmem:[%s1264_s2] ss:$0 sm:$0xff] }
  0x72   :  { %737 = vmatmul.mubr.msk.bf16.vlgmr.msra.gmra.mrb[0].mxu0 %vm137_vm1, %v121_v3  ;;  %v847_v27 = vld [vmem:[#allocation8 + $0x30] sm:$0xff]   ;;  %v848_v28 = vld [vmem:[#allocation8 + $0x38] sm:$0xff]   ;;  %v849_v29 = vld [vmem:[#allocation10] sm:$0xff]  }
  0x73   :  { %776 = vmatprep.mubr.msk.bf16.mxu0 %vm1042_vm0, %v1041_v0  ;;  %743 = vmatpush3.bf16.msra.mxu1 %v834_v5  ;;  %v850_v30 = vld [vmem:[#allocation10 + $0x8] sm:$0xff]   ;;  %v851_v31 = vld [vmem:[#allocation10 + $0x10] sm:$0xff]   ;;  %v852_v32 = vld [vmem:[#allocation10 + $0x18] sm:$0xff]  }
  0x74   :  { %744 = vmatprep.subr.bf16.mxu1 %v1041_v0  ;;  %761 = vmatpush3.bf16.msra.mxu0 %v841_v12  ;;  %v853_v33 = vld [vmem:[#allocation10 + $0x20] sm:$0xff]   ;;  %v854_v34 = vld [vmem:[#allocation10 + $0x28] sm:$0xff]   ;;  %v660_v35 = vld [vmem:[%s1266_s4] ss:$0 sm:$0xff] }
  0x75   :  { %762 = vmatprep.subr.bf16.mxu0 %v1041_v0  ;;  %v855_v43 = vld [vmem:[#allocation10 + $0x30] sm:$0xff]   ;;  %v856_v44 = vld [vmem:[#allocation10 + $0x38] sm:$0xff]   ;;  %v857_v53 = vld [vmem:[#allocation11] sm:$0xff]  }
  0x76   :  { %v669_v45 = vld [vmem:[%s1268_s6] ss:$0 sm:$0xff]  ;;  %v858_v54 = vld [vmem:[#allocation11 + $0x8] sm:$0xff]   ;;  %v860_v56 = vld [vmem:[#allocation11 + $0x18] sm:$0xff]  }
  0x77   :  { %745 = vmatpush3.bf16.msra.mxu1 %v835_v6  ;;  %v859_v55 = vld [vmem:[#allocation11 + $0x10] sm:$0xff]   ;;  %v861_v57 = vld [vmem:[#allocation11 + $0x20] sm:$0xff]   ;;  %v862_v58 = vld [vmem:[#allocation11 + $0x28] sm:$0xff]  }
  0x78   :  { %746 = vmatprep.subr.bf16.mxu1 %v1041_v0  ;;  %763 = vmatpush3.bf16.msra.mxu0 %v842_v13  ;;  %v863_v59 = vld [vmem:[#allocation11 + $0x30] sm:$0xff]   ;;  %v864_v60 = vld [vmem:[#allocation11 + $0x38] sm:$0xff]  }
  0x79   :  { %764 = vmatprep.subr.bf16.mxu0 %v1041_v0  ;;  %v678_v61 = vld [vmem:[%s1270_s8] ss:$0 sm:$0xff]  ;;  %s1044_s8 = smov [#allocation13]  }
  0x7a   :  { %s645_s5 = sshll.u32 %s1044_s8, 4  ;;  %s646_s5 = int_to_ptr.vmem [resolvable:$true] %s645_s5 }
  0x7b   :  { %747 = vmatpush3.bf16.msra.mxu1 %v836_v7  ;;  %s1001_s13 = scalar_lea.vmem %s646_s5, 128  ;;  %p1006_p7 = scmp.lt.s32.totalorder %s646_s5, %s646_s5 }
  0x7c   :  { %748 = vmatprep.subr.bf16.mxu1 %v1041_v0  ;;  %765 = vmatpush3.bf16.msra.mxu0 %v843_v14  ;;  %p1002_p6 = scmp.ne.s32.totalorder %s646_s5, %s1001_s13  ;;  %p1007_p8 = scmp.lt.s32.totalorder %s1001_s13, %s1001_s13 }
  0x7d   :  { %766 = vmatprep.subr.bf16.mxu0 %v1041_v0 }
  0x7e   :  { %p1008_p9 = por %p1007_p8, %p1006_p7 }
  0x7f   :  { %749 = vmatpush3.bf16.msra.mxu1 %v837_v8 }
  0x80   :  { %750 = vmatprep.subr.bf16.mxu1 %v1041_v0  ;;  %767 = vmatpush3.bf16.msra.mxu0 %v844_v15  ;;  %p1009_p10 = pnand %p1008_p9, %p1002_p6 }
  0x81   :  { %768 = vmatprep.subr.bf16.mxu0 %v1041_v0 }
  0x83   :  { %751 = vmatpush3.bf16.msra.mxu1 %v838_v9 }
  0x84   :  { %752 = vmatprep.subr.bf16.mxu1 %v1041_v0  ;;  %769 = vmatpush3.bf16.msra.mxu0 %v845_v16 }
  0x85   :  { %770 = vmatprep.subr.bf16.mxu0 %v1041_v0 }
  0x87   :  { %753 = vmatpush3.bf16.msra.mxu1 %v839_v10  ;;  %v687_v10 = vld [vmem:[%s1272_s10] ss:$0 sm:$0xff] }
  0x88   :  { %754 = vmatprep.subr.bf16.mxu1 %v1041_v0  ;;  %771 = vmatpush3.bf16.msra.mxu0 %v846_v17 }
  0x89   :  { %772 = vmatprep.subr.bf16.mxu0 %v1041_v0 }
  0x8b   :  { %755 = vmatpush3.bf16.msra.mxu1 %v840_v11 }
  0x8c   :  { %780 = vmatprep.subr.bf16.mxu1 %v1041_v0  ;;  %773 = vmatpush3.bf16.msra.mxu0 %v847_v27 }
  0x8d   :  { %774 = vmatprep.subr.bf16.mxu0 %v1041_v0 }
  0x90   :  { %775 = vmatpush3.bf16.msra.mxu0 %v848_v28 }
  0x91   :  { %800 = vmatprep.subr.bf16.mxu0 %v1041_v0 }
 0x145   :  { %v175_v19 = vpop.f32.mrb[0].mxu0 }
 0x146   :  { %v176_v20 = vadd.f32 %v657_v18, %v175_v19  ;;  %v738_v21 = vpop.f32.mrb[1].mxu0 }
 0x147   :  { %v178_v22 = vpop.f32.mrb[2].mxu0 }
 0x148   :  { %v181_v23 = vpack.c.bf16 %v176_v20, %v176_v20  ;;  %v739_v24 = vpop.f32.mrb[3].mxu0 }
 0x14a   :  { %v182_v26 = vmax.bf16 %v1043_v25, %v181_v23 }
 0x14c   :  { %757 = vmatmul.mubr.bf16.vlgmr.msra.gmra.mrb[0].mxu1 %v182_v26 }
 0x14d   :  { %796 = vmatprep.mubr.msk.bf16.mxu1 %vm1042_vm0, %v1041_v0  ;;  %781 = vmatpush3.bf16.msra.mxu1 %v849_v29 }
 0x14e   :  { %782 = vmatprep.subr.bf16.mxu1 %v1041_v0 }
 0x151   :  { %783 = vmatpush3.bf16.msra.mxu1 %v850_v30 }
 0x152   :  { %784 = vmatprep.subr.bf16.mxu1 %v1041_v0 }
 0x155   :  { %785 = vmatpush3.bf16.msra.mxu1 %v851_v31 }
 0x156   :  { %786 = vmatprep.subr.bf16.mxu1 %v1041_v0 }
 0x159   :  { %787 = vmatpush3.bf16.msra.mxu1 %v852_v32 }
 0x15a   :  { %788 = vmatprep.subr.bf16.mxu1 %v1041_v0 }
 0x15d   :  { %789 = vmatpush3.bf16.msra.mxu1 %v853_v33 }
 0x15e   :  { %790 = vmatprep.subr.bf16.mxu1 %v1041_v0 }
 0x161   :  { %791 = vmatpush3.bf16.msra.mxu1 %v854_v34 }
 0x162   :  { %792 = vmatprep.subr.bf16.mxu1 %v1041_v0 }
 0x165   :  { %793 = vmatpush3.bf16.msra.mxu1 %v855_v43 }
 0x166   :  { %794 = vmatprep.subr.bf16.mxu1 %v1041_v0 }
 0x169   :  { %795 = vmatpush3.bf16.msra.mxu1 %v856_v44 }
 0x21f   :  { %v288_v36 = vpop.f32.mrb[0].mxu1 }
 0x220   :  { %v289_v37 = vadd.f32 %v660_v35, %v288_v36  ;;  %v758_v38 = vpop.f32.mrb[1].mxu1 }
 0x221   :  { %v291_v39 = vpop.f32.mrb[2].mxu1 }
 0x222   :  { %v294_v40 = vpack.c.bf16 %v289_v37, %v289_v37  ;;  %v759_v41 = vpop.f32.mrb[3].mxu1 }
 0x224   :  { %v295_v42 = vmax.bf16 %v1043_v25, %v294_v40 }
 0x226   :  { %777 = vmatmul.mubr.bf16.vlgmr.msra.gmra.mrb[4].mxu0 %v295_v42 }
 0x227   :  { %816 = vmatprep.mubr.msk.bf16.mxu0 %vm1042_vm0, %v1041_v0  ;;  %801 = vmatpush3.bf16.msra.mxu0 %v857_v53 }
 0x228   :  { %802 = vmatprep.subr.bf16.mxu0 %v1041_v0 }
 0x22b   :  { %803 = vmatpush3.bf16.msra.mxu0 %v858_v54 }
 0x22c   :  { %804 = vmatprep.subr.bf16.mxu0 %v1041_v0 }
 0x22f   :  { %805 = vmatpush3.bf16.msra.mxu0 %v859_v55 }
 0x230   :  { %806 = vmatprep.subr.bf16.mxu0 %v1041_v0 }
 0x233   :  { %807 = vmatpush3.bf16.msra.mxu0 %v860_v56 }
 0x234   :  { %808 = vmatprep.subr.bf16.mxu0 %v1041_v0 }
 0x237   :  { %809 = vmatpush3.bf16.msra.mxu0 %v861_v57 }
 0x238   :  { %810 = vmatprep.subr.bf16.mxu0 %v1041_v0 }
 0x23b   :  { %811 = vmatpush3.bf16.msra.mxu0 %v862_v58 }
 0x23c   :  { %812 = vmatprep.subr.bf16.mxu0 %v1041_v0 }
 0x23f   :  { %813 = vmatpush3.bf16.msra.mxu0 %v863_v59 }
 0x240   :  { %814 = vmatprep.subr.bf16.mxu0 %v1041_v0 }
 0x243   :  { %815 = vmatpush3.bf16.msra.mxu0 %v864_v60 }
 0x2f9   :  { %v401_v46 = vpop.f32.mrb[4].mxu0 }
 0x2fa   :  { %v402_v47 = vadd.f32 %v669_v45, %v401_v46  ;;  %v778_v48 = vpop.f32.mrb[5].mxu0 }
 0x2fb   :  { %v404_v49 = vpop.f32.mrb[6].mxu0 }
 0x2fc   :  { %v407_v50 = vpack.c.bf16 %v402_v47, %v402_v47  ;;  %v779_v51 = vpop.f32.mrb[7].mxu0 }
 0x2fe   :  { %v408_v52 = vmax.bf16 %v1043_v25, %v407_v50 }
 0x300   :  { %797 = vmatmul.mubr.bf16.vlgmr.msra.gmra.mrb[4].mxu1 %v408_v52 }
 0x3d3   :  { %v514_v62 = vpop.f32.mrb[4].mxu1 }
 0x3d4   :  { %v515_v63 = vadd.f32 %v678_v61, %v514_v62  ;;  %v798_v1 = vpop.f32.mrb[5].mxu1 }
 0x3d5   :  { %v517_v2 = vpop.f32.mrb[6].mxu1 }
 0x3d6   :  { %v520_v3 = vsub.f32 0.0, %v515_v63  ;;  %v799_v4 = vpop.f32.mrb[7].mxu1 }
 0x3d8   :  { %v521_v5 = vmul.f32 1.442695, %v520_v3 }
 0x3da   :  { %865 = vpow2.f32 %v521_v5 }
 0x3e4   :  { %v866_v6 = vpop.eup %865 }
 0x3e5   :  { %v523_v7 = vadd.f32 1.0, %v866_v6 }
 0x3e7   :  { %867 = vrcp.f32 %v523_v7 }
 0x3f1   :  { %v868_v8 = vpop.eup %867 }
 0x3f2   :  { %v525_v9 = vmul.f32 %v868_v8, %v515_v63 }
 0x3f4   :  { %v526_v0 = vpack.c.bf16 %v525_v9, %v525_v9 }
 0x3f6   :  { %817 = vmatmul.mubr.bf16.vlgmr.msra.gmra.mrb[8].mxu0 %v526_v0 }
 0x4c9   :  { %v632_v11 = vpop.f32.mrb[8].mxu0 }
 0x4ca   :  { %v633_v12 = vadd.f32 %v687_v10, %v632_v11  ;;  %v818_v13 = vpop.f32.mrb[9].mxu0 }
 0x4cb   :  { %v635_v14 = vpop.f32.mrb[10].mxu0 }
 0x4cc   :  { %638 = vst [vmem:[#allocation13] sm:$0xff] %v633_v12  ;;  %v819_v15 = vpop.f32.mrb[11].mxu0 }
 0x4cd   :  { %1012 = shalt.err (!%p1009_p10)
}
 0x4ce   :  { %s1013_s10 = scalar_lea.hbm %s1273_s11, 128 }
 0x4cf   :  { %p1014_p11 = scmp.ne.s32.totalorder %s1273_s11, %s1013_s10  ;;  %p1017_p12 = scmp.lt.u32.totalorder %s1013_s10, %s1273_s11 }
 0x4d1   :  { %p1019_p13 = pnand %p1017_p12, %p1014_p11 }
 0x4d3   :  { %1022 = shalt.err (!%p1019_p13)
}
 0x4d4   :  { %648 = dma.vmem_to_hbm [thread:$0]  %s646_s5, 128, %s1273_s11, [#allocation4]  }
 0x4d5   :  { %1031 = dma.done.wait [#allocation4], 128  }
 0x4d6   :  { %1032 = vsyncadd [#allocation4], 4294967168 }
 0x4d7   :  { %652 = vsyncpa [#allocation3], 1 }
 0x4d8   :  { %653 = vsyncpa [#allocation6], 1 }
 0x4d9   :  { %654 = vsyncpa [#allocation9], 1 }
 0x4da   :  { %655 = vsyncpa [#allocation12], 1 }
 0x4db   :  { %656 = vsyncpa [#allocation4], 1 }

</bundles_post_ra>
